<compile_context>
chip_gen: v5e
topology: v5e:2x2
jax: 0.10.0
libtpu: 0.0.40
codegen_flags: <defaults>
</compile_context>

<pallas_src>
import jax
import jax.numpy as jnp
from jax.experimental import pallas as pl
from jax.experimental.pallas import tpu as pltpu


def _round_up(x, m):
    return ((x + m - 1) // m) * m


def qvalue_kernel(xa_ref, w1_ref, b1_ref, w2_ref, b2_ref, w3_ref, b3_ref,
                  wv_ref, bv_ref, out_ref):
    f32 = jnp.float32

    # fc1 + relu  (single matmul on the pre-concatenated [x, a] tile)
    h = jnp.dot(xa_ref[...], w1_ref[...], preferred_element_type=f32)
    h = jnp.maximum(h + b1_ref[...], 0.0)

    # fc2 + relu: cast activations to the weight dtype (no-op for f32 weights,
    # single-pass bf16 MXU when weights are bf16); bias + ReLU stay in f32.
    h = jnp.dot(h.astype(w2_ref.dtype), w2_ref[...], preferred_element_type=f32)
    h = jnp.maximum(h + b2_ref[...], 0.0)

    # fc3 + relu
    h = jnp.dot(h.astype(w3_ref.dtype), w3_ref[...], preferred_element_type=f32)
    h = jnp.maximum(h + b3_ref[...], 0.0)

    # v head: N=1 output -> VPU multiply + lane reduce (MXU stays free),
    # stored lane-dense as a (1, 1, bt) row.
    v = jnp.sum(h * wv_ref[...].astype(f32), axis=-1)          # (bt,)
    out_ref[...] = v[None, None, :] + bv_ref[...][None]        # (1, 1, bt)


def qvalue_forward(x, a, params, block_b=1024, matmul_dtype=None):
    """x: (B, n_state), a: (B, n_action) in f32.  Returns (B, 1) f32.

    matmul_dtype=jnp.bfloat16 halves activation/weight traffic and guarantees
    single-pass MXU on v6e/v7x (accumulation stays f32)."""
    B, n_state = x.shape
    n_action = a.shape[1]
    n_in = n_state + n_action
    fc1 = params["w1"].shape[1]
    fc2 = params["w2"].shape[1]
    fc3 = params["w3"].shape[1]

    mm_dtype = jnp.float32 if matmul_dtype is None else matmul_dtype
    mm_itemsize = jnp.finfo(mm_dtype).bits // 8
    sub = 8 * (4 // mm_itemsize)        # sublane granule: 8 (f32) / 16 (bf16)

    # --- batch tiling -------------------------------------------------------
    B8 = _round_up(B, sub)
    bt = min(_round_up(block_b, sub), B8)
    n_tiles = -(-B8 // bt)
    # Prefer an even tile count so the "parallel" batch axis can shard across
    # v7x's two TensorCores (harmless on v5e/v6e).
    if n_tiles % 2 == 1 and B8 >= 2 * sub:
        bt = _round_up(-(-B8 // (n_tiles + 1)), sub)
        n_tiles = -(-B8 // bt)
    B_pad = n_tiles * bt

    # --- wrapper-side concat + zero-pad (one fused XLA copy) ----------------
    xa = jnp.concatenate([x.astype(mm_dtype), a.astype(mm_dtype)], axis=1)
    if B_pad != B:
        xa = jnp.pad(xa, ((0, B_pad - B), (0, 0)))

    w1 = params["w1"].astype(mm_dtype)
    w2 = params["w2"].astype(mm_dtype)
    w3 = params["w3"].astype(mm_dtype)
    wv = params["wv"].astype(mm_dtype)
    b1, b2, b3, bv = params["b1"], params["b2"], params["b3"], params["bv"]

    const2 = lambda i: (0, 0)      # weights/biases resident across batch tiles
    batch2 = lambda i: (i, 0)
    out_map = lambda i: (i, 0, 0)

    flops = 2 * B_pad * (n_in * fc1 + fc1 * fc2 + fc2 * fc3 + fc3)
    bytes_accessed = (mm_itemsize * (B_pad * n_in
                                     + n_in * fc1 + fc1 * fc2 + fc2 * fc3 + fc3)
                      + 4 * (B_pad + fc1 + fc2 + fc3 + 1))

    out = pl.pallas_call(
        qvalue_kernel,
        out_shape=jax.ShapeDtypeStruct((n_tiles, 1, bt), jnp.float32),
        grid_spec=pltpu.PrefetchScalarGridSpec(
            num_scalar_prefetch=0,
            grid=(n_tiles,),
            in_specs=[
                pl.BlockSpec((bt, n_in), batch2),     # [x, a] tile
                pl.BlockSpec((n_in, fc1), const2),    # w1
                pl.BlockSpec((1, fc1), const2),       # b1
                pl.BlockSpec((fc1, fc2), const2),     # w2
                pl.BlockSpec((1, fc2), const2),       # b2
                pl.BlockSpec((fc2, fc3), const2),     # w3
                pl.BlockSpec((1, fc3), const2),       # b3
                pl.BlockSpec((1, fc3), const2),       # wv (row)
                pl.BlockSpec((1, 1), const2),         # bv
            ],
            out_specs=pl.BlockSpec((1, 1, bt), out_map),
        ),
        compiler_params=pltpu.CompilerParams(
            dimension_semantics=("parallel",),
            vmem_limit_bytes=32 * 1024 * 1024,
        ),
        cost_estimate=pl.CostEstimate(flops=flops, transcendentals=0,
                                      bytes_accessed=bytes_accessed),
    )(xa, w1, b1, w2, b2, w3, b3, wv, bv)

    # un-pad and restore the (B, 1) column layout
    return out.reshape(-1)[:B].reshape(B, 1)


def init_qvalue_params(key, n_state, n_action, fc1=64, fc2=128, fc3=256):
    """PyTorch-nn.Linear-style init: U(-1/sqrt(fan_in), 1/sqrt(fan_in)).
    Weights stored as (in, out); v-head weight kept as a (1, fc3) row."""
    dims = [(n_state + n_action, fc1), (fc1, fc2), (fc2, fc3), (fc3, 1)]
    names = ["1", "2", "3", "v"]
    params = {}
    for (fan_in, fan_out), name in zip(dims, names):
        key, kw, kb = jax.random.split(key, 3)
        bound = 1.0 / jnp.sqrt(jnp.float32(fan_in))
        params[f"w{name}"] = jax.random.uniform(
            kw, (fan_in, fan_out), jnp.float32, -bound, bound)
        params[f"b{name}"] = jax.random.uniform(
            kb, (1, fan_out), jnp.float32, -bound, bound)
    params["wv"] = params["wv"].T          # (1, fc3)
    return params


def qvalue_reference(x, a, params):
    """Pure-JAX reference (matches the PyTorch forward)."""
    h = jnp.concatenate([x, a], axis=1)
    h = jnp.maximum(h @ params["w1"] + params["b1"], 0.0)
    h = jnp.maximum(h @ params["w2"] + params["b2"], 0.0)
    h = jnp.maximum(h @ params["w3"] + params["b3"], 0.0)
    return h @ params["wv"].T + params["bv"]


if __name__ == "__main__":
    key = jax.random.PRNGKey(0)
    B, n_state, n_action = 8, 24, 8

    key, kx, ka, kp = jax.random.split(key, 4)
    x = jax.random.normal(kx, (B, n_state), jnp.float32)
    a = jax.random.normal(ka, (B, n_action), jnp.float32)
    params = init_qvalue_params(kp, n_state, n_action)

    ref = qvalue_reference(x, a, params)

    # f32 path (default): tight tolerance.
    out = jax.block_until_ready(qvalue_forward(x, a, params))
    assert out.shape == (B, 1)
    assert jnp.allclose(out, ref, atol=1e-4, rtol=1e-4)

    # bf16 matmul-operand path (v6e/v7x traffic optimization): loose tolerance.
    out_bf16 = jax.block_until_ready(
        qvalue_forward(x, a, params, matmul_dtype=jnp.bfloat16))
    assert out_bf16.shape == (B, 1)
    assert jnp.allclose(out_bf16, ref, atol=5e-2, rtol=5e-2)

    print("KERNEL_OK")
</pallas_src>

<mosaic_0001>
module attributes {stable_mosaic.version = 11 : i64} {
  func.func @qvalue_kernel(%arg0: i32, %arg1: memref<8x32xf32, #tpu.memory_space<vmem>>, %arg2: memref<32x64xf32, #tpu.memory_space<vmem>>, %arg3: memref<1x64xf32, #tpu.memory_space<vmem>>, %arg4: memref<64x128xf32, #tpu.memory_space<vmem>>, %arg5: memref<1x128xf32, #tpu.memory_space<vmem>>, %arg6: memref<128x256xf32, #tpu.memory_space<vmem>>, %arg7: memref<1x256xf32, #tpu.memory_space<vmem>>, %arg8: memref<1x256xf32, #tpu.memory_space<vmem>>, %arg9: memref<1x1xf32, #tpu.memory_space<vmem>>, %arg10: memref<1x1x8xf32, #tpu.memory_space<vmem>>) attributes {dimension_semantics = [#tpu.dimension_semantics<parallel>], iteration_bounds = array<i64: 1>, scalar_prefetch = 0 : i64, scratch_operands = 0 : i64, tpu.core_type = #tpu.core_type<tc>, window_params = [{transform_indices = @transform_0, window_bounds = array<i64: 8, 32>}, {pipeline_mode = #tpu.pipeline_mode<synchronous>, transform_indices = @transform_1, window_bounds = array<i64: 32, 64>}, {pipeline_mode = #tpu.pipeline_mode<synchronous>, transform_indices = @transform_2, window_bounds = array<i64: 1, 64>}, {pipeline_mode = #tpu.pipeline_mode<synchronous>, transform_indices = @transform_3, window_bounds = array<i64: 64, 128>}, {pipeline_mode = #tpu.pipeline_mode<synchronous>, transform_indices = @transform_4, window_bounds = array<i64: 1, 128>}, {pipeline_mode = #tpu.pipeline_mode<synchronous>, transform_indices = @transform_5, window_bounds = array<i64: 128, 256>}, {pipeline_mode = #tpu.pipeline_mode<synchronous>, transform_indices = @transform_6, window_bounds = array<i64: 1, 256>}, {pipeline_mode = #tpu.pipeline_mode<synchronous>, transform_indices = @transform_7, window_bounds = array<i64: 1, 256>}, {pipeline_mode = #tpu.pipeline_mode<synchronous>, transform_indices = @transform_8, window_bounds = array<i64: 1, 1>}, {transform_indices = @transform_9, window_bounds = array<i64: 1, 1, 8>}]} {
    %c0 = arith.constant 0 : index
    %c0_0 = arith.constant 0 : index
    %0 = vector.load %arg1[%c0, %c0_0] : memref<8x32xf32, #tpu.memory_space<vmem>>, vector<8x32xf32>
    %c0_1 = arith.constant 0 : index
    %c0_2 = arith.constant 0 : index
    %1 = vector.load %arg2[%c0_1, %c0_2] : memref<32x64xf32, #tpu.memory_space<vmem>>, vector<32x64xf32>
    %cst = arith.constant dense<0.000000e+00> : vector<8x64xf32>
    %2 = tpu.matmul %0, %1, %cst {dimension_numbers = #tpu.dot_dimension_numbers<[1], [0], [0], [1], [0, 0, 1, 1], [], []>} : vector<8x32xf32>, vector<32x64xf32>, vector<8x64xf32> -> vector<8x64xf32>
    %c0_3 = arith.constant 0 : index
    %c0_4 = arith.constant 0 : index
    %3 = vector.load %arg3[%c0_3, %c0_4] : memref<1x64xf32, #tpu.memory_space<vmem>>, vector<1x64xf32>
    %4 = vector.broadcast %3 : vector<1x64xf32> to vector<8x64xf32>
    %5 = arith.addf %2, %4 : vector<8x64xf32>
    %cst_5 = arith.constant 0.000000e+00 : f32
    %6 = vector.broadcast %cst_5 : f32 to vector<8x64xf32>
    %7 = arith.maximumf %5, %6 : vector<8x64xf32>
    %c0_6 = arith.constant 0 : index
    %c0_7 = arith.constant 0 : index
    %8 = vector.load %arg4[%c0_6, %c0_7] : memref<64x128xf32, #tpu.memory_space<vmem>>, vector<64x128xf32>
    %cst_8 = arith.constant dense<0.000000e+00> : vector<8x128xf32>
    %9 = tpu.matmul %7, %8, %cst_8 {dimension_numbers = #tpu.dot_dimension_numbers<[1], [0], [0], [1], [0, 0, 1, 1], [], []>} : vector<8x64xf32>, vector<64x128xf32>, vector<8x128xf32> -> vector<8x128xf32>
    %c0_9 = arith.constant 0 : index
    %c0_10 = arith.constant 0 : index
    %10 = vector.load %arg5[%c0_9, %c0_10] : memref<1x128xf32, #tpu.memory_space<vmem>>, vector<1x128xf32>
    %11 = vector.broadcast %10 : vector<1x128xf32> to vector<8x128xf32>
    %12 = arith.addf %9, %11 : vector<8x128xf32>
    %cst_11 = arith.constant 0.000000e+00 : f32
    %13 = vector.broadcast %cst_11 : f32 to vector<8x128xf32>
    %14 = arith.maximumf %12, %13 : vector<8x128xf32>
    %c0_12 = arith.constant 0 : index
    %c0_13 = arith.constant 0 : index
    %15 = vector.load %arg6[%c0_12, %c0_13] : memref<128x256xf32, #tpu.memory_space<vmem>>, vector<128x256xf32>
    %cst_14 = arith.constant dense<0.000000e+00> : vector<8x256xf32>
    %16 = tpu.matmul %14, %15, %cst_14 {dimension_numbers = #tpu.dot_dimension_numbers<[1], [0], [0], [1], [0, 0, 1, 1], [], []>} : vector<8x128xf32>, vector<128x256xf32>, vector<8x256xf32> -> vector<8x256xf32>
    %c0_15 = arith.constant 0 : index
    %c0_16 = arith.constant 0 : index
    %17 = vector.load %arg7[%c0_15, %c0_16] : memref<1x256xf32, #tpu.memory_space<vmem>>, vector<1x256xf32>
    %18 = vector.broadcast %17 : vector<1x256xf32> to vector<8x256xf32>
    %19 = arith.addf %16, %18 : vector<8x256xf32>
    %cst_17 = arith.constant 0.000000e+00 : f32
    %20 = vector.broadcast %cst_17 : f32 to vector<8x256xf32>
    %21 = arith.maximumf %19, %20 : vector<8x256xf32>
    %c0_18 = arith.constant 0 : index
    %c0_19 = arith.constant 0 : index
    %22 = vector.load %arg8[%c0_18, %c0_19] : memref<1x256xf32, #tpu.memory_space<vmem>>, vector<1x256xf32>
    %23 = vector.broadcast %22 : vector<1x256xf32> to vector<8x256xf32>
    %24 = arith.mulf %21, %23 : vector<8x256xf32>
    %cst_20 = arith.constant dense<0.000000e+00> : vector<8xf32>
    %25 = vector.multi_reduction <add>, %24, %cst_20 [1] : vector<8x256xf32> to vector<8xf32>
    %26 = vector.shape_cast %25 : vector<8xf32> to vector<1x1x8xf32>
    %c0_21 = arith.constant 0 : index
    %c0_22 = arith.constant 0 : index
    %27 = vector.load %arg9[%c0_21, %c0_22] : memref<1x1xf32, #tpu.memory_space<vmem>>, vector<1x1xf32>
    %28 = vector.shape_cast %27 : vector<1x1xf32> to vector<1x1x1xf32>
    %29 = vector.broadcast %28 : vector<1x1x1xf32> to vector<1x1x8xf32>
    %30 = arith.addf %26, %29 : vector<1x1x8xf32>
    %c0_23 = arith.constant 0 : index
    %c0_24 = arith.constant 0 : index
    %c0_25 = arith.constant 0 : index
    %31 = vector.load %arg10[%c0_23, %c0_24, %c0_25] : memref<1x1x8xf32, #tpu.memory_space<vmem>>, vector<1x1x8xf32>
    tpu.vector_store %arg10[%c0_23, %c0_24, %c0_25], %30 {strides = array<i32>} : memref<1x1x8xf32, #tpu.memory_space<vmem>>, vector<1x1x8xf32>,
    return
  }
  func.func @transform_0(%arg0: i32) -> (i32, i32) {
    %c0_i32 = arith.constant 0 : i32
    %c0_i32_0 = arith.constant 0 : i32
    return %arg0, %c0_i32 : i32, i32
  }
  func.func @transform_1(%arg0: i32) -> (i32, i32) {
    %c0_i32 = arith.constant 0 : i32
    %c0_i32_0 = arith.constant 0 : i32
    %c0_i32_1 = arith.constant 0 : i32
    return %c0_i32, %c0_i32_0 : i32, i32
  }
  func.func @transform_2(%arg0: i32) -> (i32, i32) {
    %c0_i32 = arith.constant 0 : i32
    %c0_i32_0 = arith.constant 0 : i32
    %c0_i32_1 = arith.constant 0 : i32
    return %c0_i32, %c0_i32_0 : i32, i32
  }
  func.func @transform_3(%arg0: i32) -> (i32, i32) {
    %c0_i32 = arith.constant 0 : i32
    %c0_i32_0 = arith.constant 0 : i32
    %c0_i32_1 = arith.constant 0 : i32
    return %c0_i32, %c0_i32_0 : i32, i32
  }
  func.func @transform_4(%arg0: i32) -> (i32, i32) {
    %c0_i32 = arith.constant 0 : i32
    %c0_i32_0 = arith.constant 0 : i32
    %c0_i32_1 = arith.constant 0 : i32
    return %c0_i32, %c0_i32_0 : i32, i32
  }
  func.func @transform_5(%arg0: i32) -> (i32, i32) {
    %c0_i32 = arith.constant 0 : i32
    %c0_i32_0 = arith.constant 0 : i32
    %c0_i32_1 = arith.constant 0 : i32
    return %c0_i32, %c0_i32_0 : i32, i32
  }
  func.func @transform_6(%arg0: i32) -> (i32, i32) {
    %c0_i32 = arith.constant 0 : i32
    %c0_i32_0 = arith.constant 0 : i32
    %c0_i32_1 = arith.constant 0 : i32
    return %c0_i32, %c0_i32_0 : i32, i32
  }
  func.func @transform_7(%arg0: i32) -> (i32, i32) {
    %c0_i32 = arith.constant 0 : i32
    %c0_i32_0 = arith.constant 0 : i32
    %c0_i32_1 = arith.constant 0 : i32
    return %c0_i32, %c0_i32_0 : i32, i32
  }
  func.func @transform_8(%arg0: i32) -> (i32, i32) {
    %c0_i32 = arith.constant 0 : i32
    %c0_i32_0 = arith.constant 0 : i32
    %c0_i32_1 = arith.constant 0 : i32
    return %c0_i32, %c0_i32_0 : i32, i32
  }
  func.func @transform_9(%arg0: i32) -> (i32, i32, i32) {
    %c0_i32 = arith.constant 0 : i32
    %c0_i32_0 = arith.constant 0 : i32
    %c0_i32_1 = arith.constant 0 : i32
    return %arg0, %c0_i32, %c0_i32_0 : i32, i32, i32
  }
}

</mosaic_0001>

<bundles_post_ra>
// kernel: tpu_custom_call.1
= control target key start
LH: loop header
LB: loop body
LE: loop exit
PB: predicated region body
PF: predicated region fallthrough
CT: control target
= control target key end

     0   :  { %s564_s0 = inlined_call_operand.hbm [shape: f32[8,32], index: 0, kind: input, shape index: {}]   ;;  %s565_s1 = inlined_call_operand.hbm [shape: f32[32,64], index: 1, kind: input, shape index: {}]   ;;  %s566_s2 = inlined_call_operand.hbm [shape: f32[1,64], index: 2, kind: input, shape index: {}]   ;;  %s567_s3 = inlined_call_operand.hbm [shape: f32[64,128], index: 3, kind: input, shape index: {}]   ;;  %s568_s4 = inlined_call_operand.vmem [shape: f32[1,128], index: 4, kind: input, shape index: {}]   ;;  %s569_s5 = inlined_call_operand.hbm [shape: f32[128,256], index: 5, kind: input, shape index: {}]   ;;  %s570_s6 = inlined_call_operand.vmem [shape: f32[1,256], index: 6, kind: input, shape index: {}]   ;;  %s571_s7 = inlined_call_operand.vmem [shape: f32[1,256], index: 7, kind: input, shape index: {}]   ;;  %s572_s8 = inlined_call_operand.<no memory space> [shape: f32[1,1], index: 8, kind: input, shape index: {}]   ;;  %s573_s9 = inlined_call_operand.hbm [shape: f32[1,1,8], index: 9, kind: output, shape index: {}]  }
   0x1   :  { %v14_v0 = vstv %s572_s8 }
   0x2   :  { %15 = vst [vmem:[#allocation2] sm:$0x1] %v14_v0 }
   0x3   :  { %16 = vsyncpa [#allocation4], 0 }
   0x4   :  { %17 = vsyncpa [#allocation7], 0 }
   0x5   :  { %18 = vsyncpa [#allocation10], 0  ;;  %s35_s13 = sshll.u32 %s565_s1, 4  ;;  %s36_s13 = int_to_ptr.hbm [resolvable:$true] %s35_s13 }
   0x6   :  { %19 = vsyncpa [#allocation5], 0  ;;  %s473_s14 = smov [#allocation6]   ;;  %s59_s18 = sshll.u32 %s567_s3, 4  ;;  %s60_s18 = int_to_ptr.hbm [resolvable:$true] %s59_s18 }
   0x7   :  { %s37_s15 = sshll.u32 %s473_s14, 4  ;;  %s474_s19 = smov 128   ;;  %s38_s15 = int_to_ptr.vmem [resolvable:$true] %s37_s15 }
   0x8   :  { %s475_s20 = smov 8   ;;  %s476_s8 = smov [#allocation9]  }
   0x9   :  { %43 = dma.hbm_to_vmem [thread:$0]  %s36_s13, 512, %s38_s15, [#allocation7], %s474_s19, %s474_s19, %s475_s20  }
   0xa   :  { %s61_s21 = sshll.u32 %s476_s8, 4  ;;  %s25_s24 = sshll.u32 %s564_s0, 4  ;;  %s62_s21 = int_to_ptr.vmem [resolvable:$true] %s61_s21  ;;  %s26_s24 = int_to_ptr.hbm [resolvable:$true] %s25_s24 }
   0xb   :  { %67 = dma.hbm_to_vmem [thread:$0]  %s60_s18, 1024, %s62_s21, [#allocation10], %s474_s19, %s474_s19, %s475_s20  }
   0xc   :  { %s49_s26 = sshll.u32 %s566_s2, 4  ;;  %s477_s27 = smov [#allocation3]   ;;  %s50_s26 = int_to_ptr.hbm [resolvable:$true] %s49_s26 }
   0xd   :  { %s27_s28 = sshll.u32 %s477_s27, 4  ;;  %s478_s3 = smov [#allocation8]   ;;  %s28_s28 = int_to_ptr.vmem [resolvable:$true] %s27_s28 }
   0xe   :  { %30 = dma.hbm_to_vmem [thread:$0]  %s26_s24, 128, %s28_s28, [#allocation4]  }
   0xf   :  { %s51_s29 = sshll.u32 %s478_s3, 4  ;;  %s74_s11 = sshll.u32 %s569_s5, 4  ;;  %s52_s29 = int_to_ptr.vmem [resolvable:$true] %s51_s29  ;;  %s75_s11 = int_to_ptr.hbm [resolvable:$true] %s74_s11 }
  0x10   :  { %54 = dma.hbm_to_vmem [thread:$0]  %s50_s26, 16, %s52_s29, [#allocation7]  }
  0x11   :  { %s479_s0 = smov [#allocation11]   ;;  %s480_s13 = smov 256  }
  0x12   :  { %s76_s12 = sshll.u32 %s479_s0, 4  ;;  %s481_s14 = smov 16   ;;  %s77_s12 = int_to_ptr.vmem [resolvable:$true] %s76_s12 }
  0x13   :  { %82 = dma.hbm_to_vmem [thread:$0]  %s75_s11, 4096, %s77_s12, [#allocation10], %s480_s13, %s480_s13, %s481_s14  }
  0x14   :  { %465 = dma.done.wait [#allocation4], 128  }
  0x15   :  { %466 = vsyncadd [#allocation4], 4294967168 }
  0x16   :  { %467 = dma.done.wait [#allocation7], 528  }
  0x17   :  { %468 = vsyncadd [#allocation7], 4294966768 }
  0x18   :  { %469 = dma.done.wait [#allocation10], 5120  }
  0x19   :  { %470 = vsyncadd [#allocation10], 4294962176  ;;  %v113_v1 = vld [vmem:[#allocation6 + $0x18] sm:$0xff]  ;;  %v112_v2 = vld [vmem:[#allocation6 + $0x10] sm:$0xff]  ;;  %vm118_vm0 = vcmask 261120   ;;  %vm155_vm1 = vcmask 523264  }
  0x1a   :  { %134 = vmatpush.msra.mxu0 %v113_v1  ;;  %v150_v3 = vld [vmem:[#allocation9 + $0x38] sm:$0xff]  ;;  %v111_v4 = vld [vmem:[#allocation6 + $0x8] sm:$0xff]  ;;  %v149_v5 = vld [vmem:[#allocation9 + $0x30] sm:$0xff]  ;;  %v482_v51 = vmov 0   ;;  %s293_s20 = sshll.u32 %s573_s9, 4  ;;  %vm284_vm2 = vcmask 57344   ;;  %s294_s20 = int_to_ptr.hbm [resolvable:$true] %s293_s20 }
  0x1b   :  { %167 = vmatpush.msra.mxu1 %v150_v3  ;;  %v148_v6 = vld [vmem:[#allocation9 + $0x28] sm:$0xff]  ;;  %v110_v7 = vld [vmem:[#allocation6] sm:$0xff]  ;;  %v109_v8 = vld [vmem:[#allocation3] sm:$0xff]  ;;  %318 = vset.pattern.permute.xlu0 %v482_v51 }
  0x1c   :  { %135 = vmatpush.msra.mxu0 %v112_v2  ;;  %v147_v9 = vld [vmem:[#allocation9 + $0x20] sm:$0xff]  ;;  %v146_v10 = vld [vmem:[#allocation9 + $0x18] sm:$0xff]  ;;  %v145_v11 = vld [vmem:[#allocation9 + $0x10] sm:$0xff] }
  0x1d   :  { %168 = vmatpush.msra.mxu1 %v149_v5  ;;  %v144_v12 = vld [vmem:[#allocation9 + $0x8] sm:$0xff]  ;;  %v143_v13 = vld [vmem:[#allocation9] sm:$0xff]  ;;  %v210_v14 = vld [vmem:[#allocation11 + $0xf0] sm:$0xff] }
  0x1e   :  { %136 = vmatpush.msra.mxu0 %v111_v4  ;;  %v211_v15 = vld [vmem:[#allocation11 + $0xf8] sm:$0xff]  ;;  %v208_v16 = vld [vmem:[#allocation11 + $0xe0] sm:$0xff]  ;;  %218 = vmatpush.msra.mxu2 %v210_v14  ;;  %v209_v17 = vld [vmem:[#allocation11 + $0xe8] sm:$0xff] }
  0x1f   :  { %169 = vmatpush.msra.mxu1 %v148_v6  ;;  %238 = vmatpush.msra.mxu3 %v211_v15  ;;  %v206_v18 = vld [vmem:[#allocation11 + $0xd0] sm:$0xff]  ;;  %v207_v19 = vld [vmem:[#allocation11 + $0xd8] sm:$0xff]  ;;  %v204_v20 = vld [vmem:[#allocation11 + $0xc0] sm:$0xff] }
  0x20   :  { %137 = vmatpush.msra.mxu0 %v110_v7  ;;  %219 = vmatpush.msra.mxu2 %v208_v16  ;;  %v205_v21 = vld [vmem:[#allocation11 + $0xc8] sm:$0xff]  ;;  %v202_v22 = vld [vmem:[#allocation11 + $0xb0] sm:$0xff]  ;;  %v203_v23 = vld [vmem:[#allocation11 + $0xb8] sm:$0xff] }
  0x21   :  { %305 = vmatmul.msk.f32.vlgmr.msra.gmra.mxu0 %vm118_vm0, %v109_v8  ;;  %170 = vmatpush.msra.mxu1 %v147_v9  ;;  %v200_v24 = vld [vmem:[#allocation11 + $0xa0] sm:$0xff]  ;;  %v201_v25 = vld [vmem:[#allocation11 + $0xa8] sm:$0xff]  ;;  %v198_v26 = vld [vmem:[#allocation11 + $0x90] sm:$0xff]  ;;  %v280_v8 = vlaneseq }
  0x22   :  { %239 = vmatpush.msra.mxu3 %v209_v17  ;;  %220 = vmatpush.msra.mxu2 %v206_v18  ;;  %v199_v27 = vld [vmem:[#allocation11 + $0x98] sm:$0xff]  ;;  %v196_v28 = vld [vmem:[#allocation11 + $0x80] sm:$0xff]  ;;  %v197_v29 = vld [vmem:[#allocation11 + $0x88] sm:$0xff] }
  0x23   :  { %171 = vmatpush.msra.mxu1 %v146_v10  ;;  %v194_v30 = vld [vmem:[#allocation11 + $0x70] sm:$0xff]  ;;  %v195_v31 = vld [vmem:[#allocation11 + $0x78] sm:$0xff]  ;;  %v192_v32 = vld [vmem:[#allocation11 + $0x60] sm:$0xff]  ;;  %v281_v10 = vand.u32 127, %v280_v8 }
  0x24   :  { %240 = vmatpush.msra.mxu3 %v207_v19  ;;  %221 = vmatpush.msra.mxu2 %v204_v20  ;;  %v193_v33 = vld [vmem:[#allocation11 + $0x68] sm:$0xff]  ;;  %v190_v34 = vld [vmem:[#allocation11 + $0x50] sm:$0xff]  ;;  %v191_v35 = vld [vmem:[#allocation11 + $0x58] sm:$0xff] }
  0x25   :  { %172 = vmatpush.msra.mxu1 %v145_v11  ;;  %v188_v36 = vld [vmem:[#allocation11 + $0x40] sm:$0xff]  ;;  %v189_v37 = vld [vmem:[#allocation11 + $0x48] sm:$0xff]  ;;  %v186_v38 = vld [vmem:[#allocation11 + $0x30] sm:$0xff] }
  0x26   :  { %241 = vmatpush.msra.mxu3 %v205_v21  ;;  %222 = vmatpush.msra.mxu2 %v202_v22  ;;  %v187_v39 = vld [vmem:[#allocation11 + $0x38] sm:$0xff]  ;;  %v184_v44 = vld [vmem:[#allocation11 + $0x20] sm:$0xff]  ;;  %v185_v45 = vld [vmem:[#allocation11 + $0x28] sm:$0xff] }
  0x27   :  { %173 = vmatpush.msra.mxu1 %v144_v12  ;;  %v319_v40 = vld [vmem:[#allocation8] ss:$0 sm:$0xff]  ;;  %v182_v46 = vld [vmem:[#allocation11 + $0x10] sm:$0xff]  ;;  %v180_v48 = vld [vmem:[#allocation11] sm:$0xff] }
  0x28   :  { %242 = vmatpush.msra.mxu3 %v203_v23  ;;  %223 = vmatpush.msra.mxu2 %v200_v24  ;;  %v183_v47 = vld [vmem:[#allocation11 + $0x18] sm:$0xff]  ;;  %v181_v49 = vld [vmem:[#allocation11 + $0x8] sm:$0xff]  ;;  %v271_v50 = vld [vmem:[#allocation2] sm:$0x1] }
  0x29   :  { %174 = vmatpush.msra.mxu1 %v143_v13  ;;  %274 = vperm.xlu0 %318, %v271_v50   ;;  %v320_v52 = vld [vmem:[%s568_s4] ss:$0 sm:$0xff]  ;;  %s483_s4 = smov [#allocation12]  }
  0x2a   :  { %243 = vmatpush.msra.mxu3 %v201_v25  ;;  %224 = vmatpush.msra.mxu2 %v198_v26  ;;  %v212_v56 = vld [vmem:[%s570_s6] sm:$0x3]  ;;  %s291_s6 = sshll.u32 %s483_s4, 4  ;;  %s292_s6 = int_to_ptr.vmem [resolvable:$true] %s291_s6 }
  0x2b   :  { %v214_v57 = vperm.slane %v212_v56, 0  ;;  %v215_v58 = vperm.slane %v212_v56, 1  ;;  %v260_v59 = vld [vmem:[%s571_s7] sm:$0x3] }
  0x2c   :  { %244 = vmatpush.msra.mxu3 %v199_v27  ;;  %225 = vmatpush.msra.mxu2 %v196_v28  ;;  %v262_v63 = vperm.slane %v260_v59, 0  ;;  %v263_v1 = vperm.slane %v260_v59, 1 }
  0x2e   :  { %245 = vmatpush.msra.mxu3 %v197_v29  ;;  %226 = vmatpush.msra.mxu2 %v194_v30 }
  0x30   :  { %246 = vmatpush.msra.mxu3 %v195_v31  ;;  %227 = vmatpush.msra.mxu2 %v192_v32 }
  0x32   :  { %247 = vmatpush.msra.mxu3 %v193_v33  ;;  %228 = vmatpush.msra.mxu2 %v190_v34 }
  0x34   :  { %248 = vmatpush.msra.mxu3 %v191_v35  ;;  %229 = vmatpush.msra.mxu2 %v188_v36 }
  0x36   :  { %249 = vmatpush.msra.mxu3 %v189_v37  ;;  %230 = vmatpush.msra.mxu2 %v186_v38 }
  0x38   :  { %250 = vmatpush.msra.mxu3 %v187_v39  ;;  %231 = vmatpush.msra.mxu2 %v184_v44 }
  0x3a   :  { %251 = vmatpush.msra.mxu3 %v185_v45  ;;  %232 = vmatpush.msra.mxu2 %v182_v46 }
  0x3c   :  { %252 = vmatpush.msra.mxu3 %v183_v47  ;;  %233 = vmatpush.msra.mxu2 %v180_v48 }
  0x3e   :  { %253 = vmatpush.msra.mxu3 %v181_v49 }
  0x9b   :  { %v275_v7 = vpop.permute.xlu0 %274 }
  0x9c   :  { %v277_v9 = vperm.slane %v275_v7, 0 }
  0x9e   :  { %v139_v41 = vpop.f32.mrf.mxu0 }
  0x9f   :  { %v140_v42 = vadd.f32 %v319_v40, %v139_v41 }
  0xa1   :  { %v142_v43 = vmax.f32 %v140_v42, 0.0 }
  0xa3   :  { %306 = vmatmul.msk.f32.vlgmr.msra.gmra.mxu1 %vm155_vm1, %v142_v43 }
 0x120   :  { %v176_v53 = vpop.f32.mrf.mxu1 }
 0x121   :  { %v177_v54 = vadd.f32 %v320_v52, %v176_v53 }
 0x123   :  { %v179_v55 = vmax.f32 %v177_v54, 0.0 }
 0x125   :  { %234 = vmatmul.f32.vlgmr.msra.gmra.mxu2 %v179_v55  ;;  %254 = vmatmul.f32.vlgmr.msra.gmra.mxu3 %v179_v55 }
 0x1a8   :  { %v235_v60 = vpop.f32.mrf.mxu2  ;;  %v255_v61 = vpop.f32.mrf.mxu3 }
 0x1a9   :  { %v236_v62 = vadd.f32 %v235_v60, %v214_v57  ;;  %v256_v0 = vadd.f32 %v255_v61, %v215_v58 }
 0x1ab   :  { %v258_v2 = vmax.f32 %v236_v62, 0.0  ;;  %v259_v3 = vmax.f32 %v256_v0, 0.0 }
 0x1ad   :  { %v266_v4 = vmul.f32 %v262_v63, %v258_v2  ;;  %v267_v5 = vmul.f32 %v263_v1, %v259_v3 }
 0x1af   :  { %v268_v6 = vadd.f32 %v267_v5, %v266_v4 }
 0x1b1   :  { %269 = vadd.xlane.f32.xlu0 %v268_v6 }
 0x224   :  { %v270_v11 = vpop.xlane.xlu0 %269 }
 0x225   :  { %v278_v12 = vadd.f32 %v277_v9, %v270_v11 }
 0x227   :  { %v282_v13 = vperm.slane %v278_v12, %v281_v10 }
 0x229   :  { %285 = vst.msk [vmem:[#allocation12] sm:$0x1] %vm284_vm2, %v282_v13 }
 0x22a   :  { %296 = dma.vmem_to_hbm [thread:$0]  %s292_s6, 16, %s294_s20, [#allocation5]  }
 0x22b   :  { %471 = dma.done.wait [#allocation5], 16  }
 0x22c   :  { %472 = vsyncadd [#allocation5], 4294967280 }
 0x22d   :  { %301 = vsyncpa [#allocation4], 1 }
 0x22e   :  { %302 = vsyncpa [#allocation7], 1 }
 0x22f   :  { %303 = vsyncpa [#allocation10], 1 }
 0x230   :  { %304 = vsyncpa [#allocation5], 1 }

</bundles_post_ra>
